<compile_context>
chip_gen: v5e
topology: v5e:2x2
jax: 0.10.0
libtpu: 0.0.40
codegen_flags: <defaults>
</compile_context>

<pallas_src>
import functools

import jax
import jax.numpy as jnp
from jax.experimental import pallas as pl
from jax.experimental.pallas import tpu as pltpu


def _round_up(x, m):
    return (x + m - 1) // m * m


# -----------------------------------------------------------------------------
# Path A: VMEM-resident table, one-hot MXU gather over (T, E) token tiles.
# -----------------------------------------------------------------------------
def _resident_gather_kernel(tok_ref, table_ref, out_ref):
    # tok_ref:   (T, 1) int32 token ids for this tile
    # table_ref: (V, E) embedding table (constant block index -> VMEM resident)
    # out_ref:   (T, E) output tile
    tok = tok_ref[...]                                    # (T, 1) int32
    T = out_ref.shape[0]
    V = table_ref.shape[0]
    vocab_iota = jax.lax.broadcasted_iota(jnp.int32, (T, V), 1)
    # One-hot gather.  Padding tokens (id 0) and out-of-range ids get an
    # all-zero row: enforces nn.Embedding(padding_idx=0) semantics without
    # relying on table[0] == 0, and is OOB-safe by construction.
    one_hot = ((tok == vocab_iota) & (tok != 0)).astype(table_ref.dtype)
    out_ref[...] = jnp.dot(
        one_hot, table_ref[...], preferred_element_type=jnp.float32
    ).astype(out_ref.dtype)


# -----------------------------------------------------------------------------
# Path B: streaming per-row HBM DMA gather with a Q-deep outstanding queue.
# -----------------------------------------------------------------------------
def _stream_gather_kernel(tok_smem, table_hbm, out_ref, sems, *, queue):
    # tok_smem:  (n_pad,) int32 token ids, scalar-prefetched into SMEM
    # table_hbm: (V, E) table left in HBM (memory_space=pl.ANY)
    # out_ref:   (T, E) output tile in VMEM (DMA target)
    # sems:      (queue,) DMA semaphores
    T, E = out_ref.shape
    V = table_hbm.shape[0]
    base = pl.program_id(0) * T

    def row_copy(j):
        tok = tok_smem[base + j]
        tok = jnp.clip(tok, 0, V - 1)      # guard against out-of-range ids
        return pltpu.make_async_copy(
            table_hbm.at[pl.ds(tok, 1), :],
            out_ref.at[pl.ds(j, 1), :],
            sems.at[j % queue])

    def issue(j):
        tok = tok_smem[base + j]

        @pl.when(tok != 0)
        def _():
            row_copy(j).start()

        @pl.when(tok == 0)
        def _():
            # Padding row: skip the DMA, write zeros directly
            # (enforces padding_idx=0 and saves gather traffic).
            out_ref[pl.ds(j, 1), :] = jnp.zeros((1, E), out_ref.dtype)

    def wait_row(j):
        tok = tok_smem[base + j]

        @pl.when(tok != 0)
        def _():
            row_copy(j).wait()

    # Prime the queue, steady state with `queue` copies in flight, then drain.
    @pl.loop(0, queue)
    def _(j):
        issue(j)

    @pl.loop(queue, T)
    def _(j):
        wait_row(j - queue)
        issue(j)

    @pl.loop(T - queue, T)
    def _(j):
        wait_row(j)


# -----------------------------------------------------------------------------
# Wrapper
# -----------------------------------------------------------------------------
def embedding_forward(x, table, *, token_tile=256, dma_queue=8,
                      max_resident_bytes=4 * 1024 * 1024):
    """x: (B, S) int token ids (0 = padding), table: (V, E) float.

    Returns (embeddings (B, S, E), mask (B, S) float32)."""
    B, S = x.shape
    V, E = table.shape
    n_tok = B * S
    tokens = x.reshape(n_tok).astype(jnp.int32)

    # Sublane-dense token tile (multiple of 8), amortizing the ~0.35us per-
    # grid-step overhead over many rows.  Capped at token_tile for VMEM.
    T = min(int(token_tile), _round_up(n_tok, 8))
    n_pad = _round_up(n_tok, T)
    n_tiles = n_pad // T
    tokens_pad = jnp.pad(tokens, (0, n_pad - n_tok))   # pad with padding id 0

    itemsize = table.dtype.itemsize
    table_bytes = V * E * itemsize

    if table_bytes <= max_resident_bytes:
        # Small vocab: keep the table VMEM-resident (constant block index ->
        # DMA'd once), one gather matmul per (T, E) tile.  Threshold is kept
        # small enough to fit v7x's 64 MiB VMEM (32 MiB scoped default) with
        # the default double-buffering.
        flat = pl.pallas_call(
            _resident_gather_kernel,
            out_shape=jax.ShapeDtypeStruct((n_pad, E), table.dtype),
            grid=(n_tiles,),
            in_specs=[
                pl.BlockSpec((T, 1), lambda i: (i, 0)),      # token ids
                pl.BlockSpec((V, E), lambda i: (0, 0)),      # resident table
            ],
            out_specs=pl.BlockSpec((T, E), lambda i: (i, 0)),
            compiler_params=pltpu.CompilerParams(
                # Token-tile axis is independent -> split across v7x TCs.
                dimension_semantics=("parallel",),
            ),
            cost_estimate=pl.CostEstimate(
                flops=2 * n_pad * V * E,
                transcendentals=0,
                bytes_accessed=table_bytes + n_pad * E * itemsize + n_pad * 4,
            ),
        )(tokens_pad.reshape(n_pad, 1), table)
    else:
        # Large vocab: stream only the needed rows out of HBM with a manual
        # Q-deep per-row DMA gather into each (T, E) output tile.
        queue = max(1, min(int(dma_queue), T))
        kernel = functools.partial(_stream_gather_kernel, queue=queue)
        flat = pl.pallas_call(
            kernel,
            out_shape=jax.ShapeDtypeStruct((n_pad, E), table.dtype),
            grid_spec=pltpu.PrefetchScalarGridSpec(
                num_scalar_prefetch=1,                       # token ids -> SMEM
                grid=(n_tiles,),
                in_specs=[pl.BlockSpec(memory_space=pl.ANY)],  # table in HBM
                out_specs=pl.BlockSpec((T, E), lambda i, tok: (i, 0)),
                scratch_shapes=[pltpu.SemaphoreType.DMA((queue,))],
            ),
            compiler_params=pltpu.CompilerParams(
                dimension_semantics=("parallel",),
            ),
            cost_estimate=pl.CostEstimate(
                flops=0,
                transcendentals=0,
                bytes_accessed=2 * n_pad * E * itemsize + n_pad * 4,
            ),
        )(tokens_pad, table)

    embeddings = flat[:n_tok].reshape(B, S, E)
    # mask = (x != 0).float() — trivial VPU work, kept in the wrapper.
    mask = (x != 0).astype(jnp.float32)
    return embeddings, mask


if __name__ == "__main__":
    key = jax.random.PRNGKey(0)
    k_tab, k_tok = jax.random.split(key)

    batch, seq = 2, 8
    vocab_size, embedding_size = 64, 128   # E multiple of 128 -> lane-dense

    # nn.Embedding(padding_idx=0) init: N(0, 1) with the padding row zeroed.
    table = jax.random.normal(k_tab, (vocab_size, embedding_size), dtype=jnp.float32)
    table = table.at[0].set(0.0)

    # Token ids in [1, vocab), post-padded with zeros.
    tokens = jax.random.randint(k_tok, (batch, seq), 1, vocab_size, dtype=jnp.int32)
    tokens = tokens.at[:, -3:].set(0)      # simulate post-padding

    # Pure-JAX reference.
    ref_emb = jnp.take(table, tokens, axis=0)
    ref_mask = (tokens != 0).astype(jnp.float32)

    # Path A: VMEM-resident table (default threshold covers this 32 KiB table).
    emb_res, mask_res = embedding_forward(tokens, table)
    # Path B: streaming HBM row-gather (forced, to exercise the large-vocab path).
    emb_str, mask_str = embedding_forward(tokens, table, max_resident_bytes=0)
    jax.block_until_ready((emb_res, mask_res, emb_str, mask_str))

    assert emb_res.shape == (batch, seq, embedding_size)
    assert mask_res.shape == (batch, seq)
    assert jnp.allclose(emb_res, ref_emb, atol=1e-6)
    assert jnp.allclose(emb_str, ref_emb, atol=1e-6)
    assert jnp.allclose(mask_res, ref_mask)
    assert jnp.allclose(mask_str, ref_mask)

    print("KERNEL_OK")
</pallas_src>

<mosaic_0001>
module attributes {stable_mosaic.version = 11 : i64} {
  func.func @_resident_gather_kernel(%arg0: i32, %arg1: memref<16x1xi32, #tpu.memory_space<vmem>>, %arg2: memref<64x128xf32, #tpu.memory_space<vmem>>, %arg3: memref<16x128xf32, #tpu.memory_space<vmem>>) attributes {dimension_semantics = [#tpu.dimension_semantics<parallel>], iteration_bounds = array<i64: 1>, scalar_prefetch = 0 : i64, scratch_operands = 0 : i64, tpu.core_type = #tpu.core_type<tc>, window_params = [{transform_indices = @transform_0, window_bounds = array<i64: 16, 1>}, {pipeline_mode = #tpu.pipeline_mode<synchronous>, transform_indices = @transform_1, window_bounds = array<i64: 64, 128>}, {transform_indices = @transform_2, window_bounds = array<i64: 16, 128>}]} {
    %c0 = arith.constant 0 : index
    %c0_0 = arith.constant 0 : index
    %0 = vector.load %arg1[%c0, %c0_0] : memref<16x1xi32, #tpu.memory_space<vmem>>, vector<16x1xi32>
    %1 = tpu.iota {dimensions = array<i32: 1>} : vector<16x64xi32>
    %2 = vector.broadcast %0 : vector<16x1xi32> to vector<16x64xi32>
    %3 = arith.cmpi eq, %2, %1 : vector<16x64xi32>
    %c0_i32 = arith.constant 0 : i32
    %4 = vector.broadcast %c0_i32 : i32 to vector<16x1xi32>
    %5 = arith.cmpi ne, %0, %4 : vector<16x1xi32>
    %6 = vector.broadcast %5 : vector<16x1xi1> to vector<16x64xi1>
    %7 = arith.andi %3, %6 : vector<16x64xi1>
    %8 = arith.extui %7 : vector<16x64xi1> to vector<16x64xi32>
    %9 = arith.sitofp %8 : vector<16x64xi32> to vector<16x64xf32>
    %c0_1 = arith.constant 0 : index
    %c0_2 = arith.constant 0 : index
    %10 = vector.load %arg2[%c0_1, %c0_2] : memref<64x128xf32, #tpu.memory_space<vmem>>, vector<64x128xf32>
    %cst = arith.constant dense<0.000000e+00> : vector<16x128xf32>
    %11 = tpu.matmul %9, %10, %cst {dimension_numbers = #tpu.dot_dimension_numbers<[1], [0], [0], [1], [0, 0, 1, 1], [], []>} : vector<16x64xf32>, vector<64x128xf32>, vector<16x128xf32> -> vector<16x128xf32>
    %c0_3 = arith.constant 0 : index
    %c0_4 = arith.constant 0 : index
    %12 = vector.load %arg3[%c0_3, %c0_4] : memref<16x128xf32, #tpu.memory_space<vmem>>, vector<16x128xf32>
    tpu.vector_store %arg3[%c0_3, %c0_4], %11 {strides = array<i32>} : memref<16x128xf32, #tpu.memory_space<vmem>>, vector<16x128xf32>,
    return
  }
  func.func @transform_0(%arg0: i32) -> (i32, i32) {
    %c0_i32 = arith.constant 0 : i32
    %c0_i32_0 = arith.constant 0 : i32
    return %arg0, %c0_i32 : i32, i32
  }
  func.func @transform_1(%arg0: i32) -> (i32, i32) {
    %c0_i32 = arith.constant 0 : i32
    %c0_i32_0 = arith.constant 0 : i32
    %c0_i32_1 = arith.constant 0 : i32
    return %c0_i32, %c0_i32_0 : i32, i32
  }
  func.func @transform_2(%arg0: i32) -> (i32, i32) {
    %c0_i32 = arith.constant 0 : i32
    %c0_i32_0 = arith.constant 0 : i32
    return %arg0, %c0_i32 : i32, i32
  }
}

</mosaic_0001>

<bundles_post_ra>
// kernel: tpu_custom_call.1
= control target key start
LH: loop header
LB: loop body
LE: loop exit
PB: predicated region body
PF: predicated region fallthrough
CT: control target
= control target key end

     0   :  { %7 = vsyncpa [#allocation3], 0  ;;  %s228_s0 = inlined_call_operand.vmem [shape: s32[16,1], index: 0, kind: input, shape index: {}]   ;;  %s229_s1 = inlined_call_operand.hbm [shape: f32[64,128], index: 1, kind: input, shape index: {}]   ;;  %s230_s2 = inlined_call_operand.hbm [shape: f32[16,128], index: 2, kind: output, shape index: {}]  }
   0x1   :  { %8 = vsyncpa [#allocation4], 0  ;;  %s15_s11 = sshll.u32 %s229_s1, 4  ;;  %s189_s12 = smov [#allocation2]   ;;  %s16_s11 = int_to_ptr.hbm [resolvable:$true] %s15_s11 }
   0x2   :  { %s17_s13 = sshll.u32 %s189_s12, 4  ;;  %s190_s14 = smov 128   ;;  %s18_s13 = int_to_ptr.vmem [resolvable:$true] %s17_s13 }
   0x3   :  { %s191_s15 = smov 8  }
   0x4   :  { %23 = dma.hbm_to_vmem [thread:$0]  %s16_s11, 1024, %s18_s13, [#allocation3], %s190_s14, %s190_s14, %s191_s15  }
   0x5   :  { %185 = dma.done.wait [#allocation3], 1024  }
   0x6   :  { %186 = vsyncadd [#allocation3], 4294966272  ;;  %v192_v0 = vmov 0   ;;  %v28_v1 = vld [vmem:[%s228_s0] sm:$0xff]  ;;  %v65_v2 = vld [vmem:[#allocation2 + $0x38] sm:$0xff]  ;;  %v30_v13 = vlaneseq  ;;  %vm66_vm4 = vcmask 523264  }
   0x7   :  { %135 = vset.pattern.permute.xlu0 %v192_v0  ;;  %136 = vset.pattern.permute.xlu1 %v192_v0  ;;  %vm40_vm0 = vcmp.ne.s32.totalorder %v28_v1, 0  ;;  %v64_v3 = vld [vmem:[#allocation2 + $0x30] sm:$0xff]  ;;  %v29_v5 = vld [vmem:[%s228_s0 + $0x8] sm:$0xff]  ;;  %v62_v7 = vld [vmem:[#allocation2 + $0x20] sm:$0xff]  ;;  %v193_v17 = vmov 0.0   ;;  %s194_s0 = smov [#allocation5]  }
   0x8   :  { %33 = vperm.xlu0 %135, %v28_v1   ;;  %81 = vmatpush.msra.mxu0 %v65_v2  ;;  %v42_v4 = vsel %vm40_vm0, 1, %v192_v0  ;;  %v63_v6 = vld [vmem:[#allocation2 + $0x28] sm:$0xff]  ;;  %vm41_vm1 = vcmp.ne.s32.totalorder %v29_v5, 0  ;;  %v61_v8 = vld [vmem:[#allocation2 + $0x18] sm:$0xff]  ;;  %v60_v10 = vld [vmem:[#allocation2 + $0x10] sm:$0xff]  ;;  %v31_v14 = vand.u32 127, %v30_v13 }
   0x9   :  { %121 = vmatpush.msra.mxu1 %v65_v2  ;;  %45 = vperm.xlu1 %136, %v42_v4   ;;  %v43_v9 = vsel %vm41_vm1, 1, %v192_v0  ;;  %v59_v11 = vld [vmem:[#allocation2 + $0x8] sm:$0xff]  ;;  %v58_v12 = vld [vmem:[#allocation2] sm:$0xff]  ;;  %s102_s19 = sshll.u32 %s194_s0, 4  ;;  %s104_s22 = sshll.u32 %s230_s2, 4  ;;  %s103_s19 = int_to_ptr.vmem [resolvable:$true] %s102_s19  ;;  %s105_s22 = int_to_ptr.hbm [resolvable:$true] %s104_s22 }
   0xa   :  { %82 = vmatpush.msra.mxu0 %v64_v3 }
   0xb   :  { %122 = vmatpush.msra.mxu1 %v64_v3 }
   0xc   :  { %83 = vmatpush.msra.mxu0 %v63_v6 }
   0xd   :  { %123 = vmatpush.msra.mxu1 %v63_v6 }
   0xe   :  { %84 = vmatpush.msra.mxu0 %v62_v7 }
   0xf   :  { %124 = vmatpush.msra.mxu1 %v62_v7 }
  0x10   :  { %36 = vperm.xlu0 %135, %v29_v5   ;;  %85 = vmatpush.msra.mxu0 %v61_v8 }
  0x11   :  { %125 = vmatpush.msra.mxu1 %v61_v8  ;;  %48 = vperm.xlu1 %136, %v43_v9  }
  0x12   :  { %86 = vmatpush.msra.mxu0 %v60_v10 }
  0x13   :  { %126 = vmatpush.msra.mxu1 %v60_v10 }
  0x14   :  { %87 = vmatpush.msra.mxu0 %v59_v11 }
  0x15   :  { %127 = vmatpush.msra.mxu1 %v59_v11 }
  0x16   :  { %88 = vmatpush.msra.mxu0 %v58_v12 }
  0x17   :  { %128 = vmatpush.msra.mxu1 %v58_v12 }
  0x7a   :  { %v34_v15 = vpop.permute.xlu0 %33 }
  0x7b   :  { %vm38_vm2 = vcmp.eq.s32.totalorder %v34_v15, %v31_v14  ;;  %v46_v16 = vpop.permute.xlu1 %45 }
  0x7c   :  { %vm50_vm3 = vcmp.eq.s32.totalorder %v46_v16, 1 }
  0x7d   :  { %vm52_vm5 = vmand %vm38_vm2, %vm50_vm3 }
  0x7e   :  { %v117_v18 = vsel %vm52_vm5, 1.0, %v193_v17 }
  0x7f   :  { %119 = vmatmul.msk.f32.vlgmr.msra.gmra.mxu0 %vm66_vm4, %v117_v18 }
  0x82   :  { %v37_v19 = vpop.permute.xlu0 %36 }
  0x83   :  { %v49_v20 = vpop.permute.xlu1 %48  ;;  %vm39_vm6 = vcmp.eq.s32.totalorder %v37_v19, %v31_v14 }
  0x84   :  { %vm51_vm7 = vcmp.eq.s32.totalorder %v49_v20, 1 }
  0x85   :  { %vm53_vm8 = vmand %vm39_vm6, %vm51_vm7 }
  0x86   :  { %v118_v21 = vsel %vm53_vm8, 1.0, %v193_v17 }
  0x87   :  { %120 = vmatmul.msk.f32.vlgmr.msra.gmra.mxu1 %vm66_vm4, %v118_v21 }
  0xfc   :  { %v90_v22 = vpop.f32.mrf.mxu0 }
  0xfd   :  { %96 = vst [vmem:[#allocation5] sm:$0xff] %v90_v22 }
 0x104   :  { %v93_v23 = vpop.f32.mrf.mxu1 }
 0x105   :  { %97 = vst [vmem:[#allocation5 + $0x8] sm:$0xff] %v93_v23 }
 0x106   :  { %110 = dma.vmem_to_hbm [thread:$0]  %s103_s19, 256, %s105_s22, [#allocation4], %s190_s14, %s190_s14, %s191_s15  }
 0x107   :  { %187 = dma.done.wait [#allocation4], 256  }
 0x108   :  { %188 = vsyncadd [#allocation4], 4294967040 }
 0x109   :  { %115 = vsyncpa [#allocation3], 1 }
 0x10a   :  { %116 = vsyncpa [#allocation4], 1 }

</bundles_post_ra>
